<compile_context>
chip_gen: v7x
topology: tpu7x:2x2x1
jax: 0.10.0
libtpu: 0.0.40
codegen_flags: <defaults>
</compile_context>

<pallas_src>
import functools

import jax
import jax.numpy as jnp
from jax import lax
from jax.experimental import pallas as pl
from jax.experimental.pallas import tpu as pltpu


# ---------------------------------------------------------------------------
# In-kernel math
# ---------------------------------------------------------------------------
def _segment_allsum2(x, y, seg_len):
    """All-reduce sum within aligned power-of-two segments along the lane axis.

    x, y: (rows, W) float32 with W a multiple of seg_len (seg_len a power of
    two).  Returns (sx, sy) where EVERY lane holds the sum over its own
    segment.  Implemented as a hypercube butterfly out of pltpu.roll (XLU) +
    select (VPU).  The roll sign convention is resolved at runtime by rolling
    a lane-index iota the same way, so correctness does not depend on it.
    """
    w = x.shape[-1]
    axis = x.ndim - 1
    lane = lax.broadcasted_iota(jnp.int32, x.shape, axis)
    d = 1
    while d < seg_len:
        la = pltpu.roll(lane, shift=d, axis=axis)
        take_a = (lane ^ la) == d          # the 'a' roll delivered lane j ^ d
        xa = pltpu.roll(x, shift=d, axis=axis)
        xb = pltpu.roll(x, shift=w - d, axis=axis)
        ya = pltpu.roll(y, shift=d, axis=axis)
        yb = pltpu.roll(y, shift=w - d, axis=axis)
        x = x + jnp.where(take_a, xa, xb)
        y = y + jnp.where(take_a, ya, yb)
        d *= 2
    return x, y


def _reflect(v, z, seg_count, seg_len):
    """z - 2 * v * <v, z> / <v, v>, per length-`seg_len` row segment (f32)."""
    if seg_count == 1:
        vz = jnp.sum(v * z, axis=-1, keepdims=True)
        nsq = jnp.sum(v * v, axis=-1, keepdims=True)
    else:
        vz, nsq = _segment_allsum2(v * z, v * v, seg_len)
    scale = 2.0 * vz * pl.reciprocal(nsq, approx=False)
    return z - v * scale


# ---------------------------------------------------------------------------
# Kernels
# ---------------------------------------------------------------------------
def _hf_kernel(v_ref, z_ref, out_ref, *, seg_count, seg_len):
    v = v_ref[...].astype(jnp.float32)
    z = z_ref[...].astype(jnp.float32)
    out_ref[...] = _reflect(v, z, seg_count, seg_len).astype(out_ref.dtype)


def _hf_chain_kernel(vs_ref, z_ref, out_ref, *, seg_count, seg_len):
    """K chained reflections: out stays resident in VMEM across the k axis."""
    k = pl.program_id(1)

    @pl.when(k == 0)
    def _():
        out_ref[...] = z_ref[...]

    v = vs_ref[0].astype(jnp.float32)                 # (tb, lanes) for step k
    z = out_ref[...].astype(jnp.float32)              # resident accumulator
    out_ref[...] = _reflect(v, z, seg_count, seg_len).astype(out_ref.dtype)


# ---------------------------------------------------------------------------
# Tiling helpers
# ---------------------------------------------------------------------------
def _lane_grouping(batch, latent):
    """Fold G batch rows into the lane axis so stores are 128-lane dense."""
    if latent < 128 and 128 % latent == 0 and batch % (128 // latent) == 0:
        return 128 // latent
    return 1


def _pick_block_rows(total_rows, row_bytes, target_bytes):
    """Rows per block: ~target_bytes per input block, a multiple of 8, and at
    least two grid steps on larger inputs so the v7x megacore has parallel
    work.  Falls back to a single full-extent block for tiny inputs."""
    tb = max(8, (target_bytes // max(row_bytes, 1)) // 8 * 8)
    if total_rows >= 16:
        half = (-(-total_rows // 2) + 7) // 8 * 8     # ceil(rows/2), mult of 8
        tb = min(tb, half)
    if tb >= total_rows:
        return total_rows                             # full-extent block
    return tb


def _vmem_limit_bytes(block_bytes, num_blocked_arrays):
    """Override the scoped-VMEM limit only when large blocks need it."""
    need = 2 * num_blocked_arrays * block_bytes + (2 << 20)   # double-buffered
    if need <= (16 << 20):          # fits even v5e's 16 MiB default
        return None
    return int(min(need, 128 << 20))


# ---------------------------------------------------------------------------
# Wrappers
# ---------------------------------------------------------------------------
def hf_forward(v, z, *, target_block_bytes=1 << 20):
    """Single Householder reflection.  v, z: (B, L) -> (B, L)."""
    assert v.shape == z.shape and v.ndim == 2
    batch, latent = v.shape
    itemsize = jnp.dtype(z.dtype).itemsize

    group = _lane_grouping(batch, latent)
    lanes = group * latent            # multiple of 128 when grouped
    rows = batch // group
    vg = v.reshape(rows, lanes)       # free row-major reshape (no HBM traffic)
    zg = z.reshape(rows, lanes)

    tb = _pick_block_rows(rows, lanes * itemsize, target_block_bytes)
    grid = (pl.cdiv(rows, tb),)
    kernel = functools.partial(_hf_kernel, seg_count=group, seg_len=latent)

    out = pl.pallas_call(
        kernel,
        out_shape=jax.ShapeDtypeStruct((rows, lanes), z.dtype),
        grid=grid,
        in_specs=[
            pl.BlockSpec((tb, lanes), lambda i: (i, 0)),
            pl.BlockSpec((tb, lanes), lambda i: (i, 0)),
        ],
        out_specs=pl.BlockSpec((tb, lanes), lambda i: (i, 0)),
        input_output_aliases={1: 0},          # z donates its HBM buffer
        compiler_params=pltpu.CompilerParams(
            dimension_semantics=("parallel",),
            vmem_limit_bytes=_vmem_limit_bytes(tb * lanes * itemsize, 3),
        ),
        cost_estimate=pl.CostEstimate(
            flops=8 * batch * latent,
            transcendentals=0,
            bytes_accessed=3 * batch * latent * itemsize,
        ),
    )(vg, zg)
    return out.reshape(batch, latent)


def hf_forward_chain(vs, z, *, target_block_bytes=1 << 20):
    """Apply K stacked HF steps in one kernel.  vs: (K, B, L), z: (B, L)."""
    num_steps, batch, latent = vs.shape
    assert z.shape == (batch, latent)
    itemsize = jnp.dtype(z.dtype).itemsize

    group = _lane_grouping(batch, latent)
    lanes = group * latent
    rows = batch // group
    vsg = vs.reshape(num_steps, rows, lanes)  # free reshape
    zg = z.reshape(rows, lanes)

    tb = _pick_block_rows(rows, lanes * itemsize, target_block_bytes)
    grid = (pl.cdiv(rows, tb), num_steps)     # batch parallel, K innermost
    kernel = functools.partial(_hf_chain_kernel, seg_count=group, seg_len=latent)

    out = pl.pallas_call(
        kernel,
        out_shape=jax.ShapeDtypeStruct((rows, lanes), z.dtype),
        grid=grid,
        in_specs=[
            pl.BlockSpec((1, tb, lanes), lambda b, k: (k, b, 0)),
            pl.BlockSpec((tb, lanes), lambda b, k: (b, 0)),
        ],
        out_specs=pl.BlockSpec((tb, lanes), lambda b, k: (b, 0)),
        input_output_aliases={1: 0},          # z donates its HBM buffer
        compiler_params=pltpu.CompilerParams(
            dimension_semantics=("parallel", "arbitrary"),
            vmem_limit_bytes=_vmem_limit_bytes(tb * lanes * itemsize, 3),
        ),
        cost_estimate=pl.CostEstimate(
            flops=8 * num_steps * batch * latent,
            transcendentals=0,
            bytes_accessed=(num_steps + 2) * batch * latent * itemsize,
        ),
    )(vsg, zg)
    return out.reshape(batch, latent)


class HF:
    """Stateless JAX counterpart of the PyTorch HF module."""

    def __call__(self, v, z):
        return hf_forward(v, z)


# ---------------------------------------------------------------------------
# Pure-JAX reference (mirrors the PyTorch bmm path)
# ---------------------------------------------------------------------------
def hf_reference(v, z):
    vvT = jnp.einsum("bi,bj->bij", v, v)
    vvTz = jnp.einsum("bij,bj->bi", vvT, z)
    norm_sq = jnp.sum(v * v, axis=1, keepdims=True)
    return z - 2.0 * vvTz / norm_sq


if __name__ == "__main__":
    key = jax.random.PRNGKey(0)
    k1, k2, k3, k4, k5, k6, k7, k8, k9 = jax.random.split(key, 9)

    fwd = jax.jit(hf_forward)
    chain = jax.jit(hf_forward_chain)

    # Case 1: small batch, L | 128 -> grouped lane-dense path, single block.
    v = jax.random.normal(k1, (8, 32), dtype=jnp.float32)
    z = jax.random.normal(k2, (8, 32), dtype=jnp.float32)
    out = jax.block_until_ready(fwd(v, z))
    ref = hf_reference(v, z)
    assert out.shape == (8, 32)
    assert jnp.allclose(out, ref, atol=1e-5, rtol=1e-5), float(jnp.max(jnp.abs(out - ref)))

    # Case 2: bigger batch -> grouped lane-dense path, tiled parallel grid.
    v = jax.random.normal(k3, (256, 32), dtype=jnp.float32)
    z = jax.random.normal(k4, (256, 32), dtype=jnp.float32)
    out = jax.block_until_ready(fwd(v, z))
    ref = hf_reference(v, z)
    assert jnp.allclose(out, ref, atol=1e-5, rtol=1e-5), float(jnp.max(jnp.abs(out - ref)))

    # Case 3: latent >= 128 -> plain row layout (already lane-dense), tiled.
    v = jax.random.normal(k5, (16, 256), dtype=jnp.float32)
    z = jax.random.normal(k6, (16, 256), dtype=jnp.float32)
    out = jax.block_until_ready(fwd(v, z))
    ref = hf_reference(v, z)
    assert jnp.allclose(out, ref, atol=1e-5, rtol=1e-5), float(jnp.max(jnp.abs(out - ref)))

    # Case 4: no friendly grouping/tiling -> full-extent block fallback.
    v = jax.random.normal(k7, (10, 48), dtype=jnp.float32)
    z = jax.random.normal(k8, (10, 48), dtype=jnp.float32)
    out = jax.block_until_ready(fwd(v, z))
    ref = hf_reference(v, z)
    assert jnp.allclose(out, ref, atol=1e-5, rtol=1e-5), float(jnp.max(jnp.abs(out - ref)))

    # Case 5: K chained reflections in a single kernel launch.
    vs = jax.random.normal(k9, (4, 8, 32), dtype=jnp.float32)
    z5 = jax.random.normal(k2, (8, 32), dtype=jnp.float32)
    ref5 = z5
    for step in range(4):
        ref5 = hf_reference(vs[step], ref5)
    out5 = jax.block_until_ready(chain(vs, z5))
    assert out5.shape == (8, 32)
    assert jnp.allclose(out5, ref5, atol=1e-4, rtol=1e-4), float(jnp.max(jnp.abs(out5 - ref5)))

    print("KERNEL_OK")
</pallas_src>

<mosaic_0001>
module attributes {stable_mosaic.version = 11 : i64} {
  func.func @_hf_kernel(%arg0: i32, %arg1: memref<2x128xf32, #tpu.memory_space<vmem>>, %arg2: memref<2x128xf32, #tpu.memory_space<vmem>>, %arg3: memref<2x128xf32, #tpu.memory_space<vmem>>) attributes {dimension_semantics = [#tpu.dimension_semantics<parallel>], iteration_bounds = array<i64: 1>, scalar_prefetch = 0 : i64, scratch_operands = 0 : i64, tpu.core_type = #tpu.core_type<tc>, window_params = [{transform_indices = @transform_0, window_bounds = array<i64: 2, 128>}, {transform_indices = @transform_1, window_bounds = array<i64: 2, 128>}, {transform_indices = @transform_2, window_bounds = array<i64: 2, 128>}]} {
    %c0 = arith.constant 0 : index
    %c0_0 = arith.constant 0 : index
    %0 = vector.load %arg1[%c0, %c0_0] : memref<2x128xf32, #tpu.memory_space<vmem>>, vector<2x128xf32>
    %c0_1 = arith.constant 0 : index
    %c0_2 = arith.constant 0 : index
    %1 = vector.load %arg2[%c0_1, %c0_2] : memref<2x128xf32, #tpu.memory_space<vmem>>, vector<2x128xf32>
    %2 = arith.mulf %0, %1 : vector<2x128xf32>
    %3 = arith.mulf %0, %0 : vector<2x128xf32>
    %4 = tpu.iota {dimensions = array<i32: 1>} : vector<2x128xi32>
    %c1_i32 = arith.constant 1 : i32
    %5 = tpu.dynamic_rotate %4 by %c1_i32 dim 1 : vector<2x128xi32>, i32 -> vector<2x128xi32>
    %6 = arith.xori %4, %5 : vector<2x128xi32>
    %c1_i32_3 = arith.constant 1 : i32
    %7 = vector.broadcast %c1_i32_3 : i32 to vector<2x128xi32>
    %8 = arith.cmpi eq, %6, %7 : vector<2x128xi32>
    %c1_i32_4 = arith.constant 1 : i32
    %9 = tpu.dynamic_rotate %2 by %c1_i32_4 dim 1 : vector<2x128xf32>, i32 -> vector<2x128xf32>
    %c127_i32 = arith.constant 127 : i32
    %10 = tpu.dynamic_rotate %2 by %c127_i32 dim 1 : vector<2x128xf32>, i32 -> vector<2x128xf32>
    %c1_i32_5 = arith.constant 1 : i32
    %11 = tpu.dynamic_rotate %3 by %c1_i32_5 dim 1 : vector<2x128xf32>, i32 -> vector<2x128xf32>
    %c127_i32_6 = arith.constant 127 : i32
    %12 = tpu.dynamic_rotate %3 by %c127_i32_6 dim 1 : vector<2x128xf32>, i32 -> vector<2x128xf32>
    %13 = arith.select %8, %9, %10 : vector<2x128xi1>, vector<2x128xf32>
    %14 = arith.addf %2, %13 : vector<2x128xf32>
    %15 = arith.select %8, %11, %12 : vector<2x128xi1>, vector<2x128xf32>
    %16 = arith.addf %3, %15 : vector<2x128xf32>
    %c2_i32 = arith.constant 2 : i32
    %17 = tpu.dynamic_rotate %4 by %c2_i32 dim 1 : vector<2x128xi32>, i32 -> vector<2x128xi32>
    %18 = arith.xori %4, %17 : vector<2x128xi32>
    %c2_i32_7 = arith.constant 2 : i32
    %19 = vector.broadcast %c2_i32_7 : i32 to vector<2x128xi32>
    %20 = arith.cmpi eq, %18, %19 : vector<2x128xi32>
    %c2_i32_8 = arith.constant 2 : i32
    %21 = tpu.dynamic_rotate %14 by %c2_i32_8 dim 1 : vector<2x128xf32>, i32 -> vector<2x128xf32>
    %c126_i32 = arith.constant 126 : i32
    %22 = tpu.dynamic_rotate %14 by %c126_i32 dim 1 : vector<2x128xf32>, i32 -> vector<2x128xf32>
    %c2_i32_9 = arith.constant 2 : i32
    %23 = tpu.dynamic_rotate %16 by %c2_i32_9 dim 1 : vector<2x128xf32>, i32 -> vector<2x128xf32>
    %c126_i32_10 = arith.constant 126 : i32
    %24 = tpu.dynamic_rotate %16 by %c126_i32_10 dim 1 : vector<2x128xf32>, i32 -> vector<2x128xf32>
    %25 = arith.select %20, %21, %22 : vector<2x128xi1>, vector<2x128xf32>
    %26 = arith.addf %14, %25 : vector<2x128xf32>
    %27 = arith.select %20, %23, %24 : vector<2x128xi1>, vector<2x128xf32>
    %28 = arith.addf %16, %27 : vector<2x128xf32>
    %c4_i32 = arith.constant 4 : i32
    %29 = tpu.dynamic_rotate %4 by %c4_i32 dim 1 : vector<2x128xi32>, i32 -> vector<2x128xi32>
    %30 = arith.xori %4, %29 : vector<2x128xi32>
    %c4_i32_11 = arith.constant 4 : i32
    %31 = vector.broadcast %c4_i32_11 : i32 to vector<2x128xi32>
    %32 = arith.cmpi eq, %30, %31 : vector<2x128xi32>
    %c4_i32_12 = arith.constant 4 : i32
    %33 = tpu.dynamic_rotate %26 by %c4_i32_12 dim 1 : vector<2x128xf32>, i32 -> vector<2x128xf32>
    %c124_i32 = arith.constant 124 : i32
    %34 = tpu.dynamic_rotate %26 by %c124_i32 dim 1 : vector<2x128xf32>, i32 -> vector<2x128xf32>
    %c4_i32_13 = arith.constant 4 : i32
    %35 = tpu.dynamic_rotate %28 by %c4_i32_13 dim 1 : vector<2x128xf32>, i32 -> vector<2x128xf32>
    %c124_i32_14 = arith.constant 124 : i32
    %36 = tpu.dynamic_rotate %28 by %c124_i32_14 dim 1 : vector<2x128xf32>, i32 -> vector<2x128xf32>
    %37 = arith.select %32, %33, %34 : vector<2x128xi1>, vector<2x128xf32>
    %38 = arith.addf %26, %37 : vector<2x128xf32>
    %39 = arith.select %32, %35, %36 : vector<2x128xi1>, vector<2x128xf32>
    %40 = arith.addf %28, %39 : vector<2x128xf32>
    %c8_i32 = arith.constant 8 : i32
    %41 = tpu.dynamic_rotate %4 by %c8_i32 dim 1 : vector<2x128xi32>, i32 -> vector<2x128xi32>
    %42 = arith.xori %4, %41 : vector<2x128xi32>
    %c8_i32_15 = arith.constant 8 : i32
    %43 = vector.broadcast %c8_i32_15 : i32 to vector<2x128xi32>
    %44 = arith.cmpi eq, %42, %43 : vector<2x128xi32>
    %c8_i32_16 = arith.constant 8 : i32
    %45 = tpu.dynamic_rotate %38 by %c8_i32_16 dim 1 : vector<2x128xf32>, i32 -> vector<2x128xf32>
    %c120_i32 = arith.constant 120 : i32
    %46 = tpu.dynamic_rotate %38 by %c120_i32 dim 1 : vector<2x128xf32>, i32 -> vector<2x128xf32>
    %c8_i32_17 = arith.constant 8 : i32
    %47 = tpu.dynamic_rotate %40 by %c8_i32_17 dim 1 : vector<2x128xf32>, i32 -> vector<2x128xf32>
    %c120_i32_18 = arith.constant 120 : i32
    %48 = tpu.dynamic_rotate %40 by %c120_i32_18 dim 1 : vector<2x128xf32>, i32 -> vector<2x128xf32>
    %49 = arith.select %44, %45, %46 : vector<2x128xi1>, vector<2x128xf32>
    %50 = arith.addf %38, %49 : vector<2x128xf32>
    %51 = arith.select %44, %47, %48 : vector<2x128xi1>, vector<2x128xf32>
    %52 = arith.addf %40, %51 : vector<2x128xf32>
    %c16_i32 = arith.constant 16 : i32
    %53 = tpu.dynamic_rotate %4 by %c16_i32 dim 1 : vector<2x128xi32>, i32 -> vector<2x128xi32>
    %54 = arith.xori %4, %53 : vector<2x128xi32>
    %c16_i32_19 = arith.constant 16 : i32
    %55 = vector.broadcast %c16_i32_19 : i32 to vector<2x128xi32>
    %56 = arith.cmpi eq, %54, %55 : vector<2x128xi32>
    %c16_i32_20 = arith.constant 16 : i32
    %57 = tpu.dynamic_rotate %50 by %c16_i32_20 dim 1 : vector<2x128xf32>, i32 -> vector<2x128xf32>
    %c112_i32 = arith.constant 112 : i32
    %58 = tpu.dynamic_rotate %50 by %c112_i32 dim 1 : vector<2x128xf32>, i32 -> vector<2x128xf32>
    %c16_i32_21 = arith.constant 16 : i32
    %59 = tpu.dynamic_rotate %52 by %c16_i32_21 dim 1 : vector<2x128xf32>, i32 -> vector<2x128xf32>
    %c112_i32_22 = arith.constant 112 : i32
    %60 = tpu.dynamic_rotate %52 by %c112_i32_22 dim 1 : vector<2x128xf32>, i32 -> vector<2x128xf32>
    %61 = arith.select %56, %57, %58 : vector<2x128xi1>, vector<2x128xf32>
    %62 = arith.addf %50, %61 : vector<2x128xf32>
    %63 = arith.select %56, %59, %60 : vector<2x128xi1>, vector<2x128xf32>
    %64 = arith.addf %52, %63 : vector<2x128xf32>
    %cst = arith.constant 2.000000e+00 : f32
    %65 = vector.broadcast %cst : f32 to vector<2x128xf32>
    %66 = arith.mulf %65, %62 : vector<2x128xf32>
    %67 = tpu.reciprocal %64 : vector<2x128xf32> -> vector<2x128xf32>
    %68 = arith.mulf %66, %67 : vector<2x128xf32>
    %69 = arith.mulf %0, %68 : vector<2x128xf32>
    %70 = arith.subf %1, %69 : vector<2x128xf32>
    %c0_23 = arith.constant 0 : index
    %c0_24 = arith.constant 0 : index
    %71 = vector.load %arg3[%c0_23, %c0_24] : memref<2x128xf32, #tpu.memory_space<vmem>>, vector<2x128xf32>
    tpu.vector_store %arg3[%c0_23, %c0_24], %70 {strides = array<i32>} : memref<2x128xf32, #tpu.memory_space<vmem>>, vector<2x128xf32>,
    return
  }
  func.func @transform_0(%arg0: i32) -> (i32, i32) {
    %c0_i32 = arith.constant 0 : i32
    %c0_i32_0 = arith.constant 0 : i32
    return %arg0, %c0_i32 : i32, i32
  }
  func.func @transform_1(%arg0: i32) -> (i32, i32) {
    %c0_i32 = arith.constant 0 : i32
    %c0_i32_0 = arith.constant 0 : i32
    return %arg0, %c0_i32 : i32, i32
  }
  func.func @transform_2(%arg0: i32) -> (i32, i32) {
    %c0_i32 = arith.constant 0 : i32
    %c0_i32_0 = arith.constant 0 : i32
    return %arg0, %c0_i32 : i32, i32
  }
}

</mosaic_0001>

<bundles_post_ra>
// kernel: hf_forward.1
= control target key start
LH: loop header
LB: loop body
LE: loop exit
PB: predicated region body
PF: predicated region fallthrough
CT: control target
= control target key end

     0   :  { %v15_v0 = vlaneseq  ;;  %s119_s13 = smov 1   ;;  %s120_s14 = smov 127   ;;  %s175_s0 = inlined_call_operand.vmem [shape: f32[2,128], index: 0, kind: input, shape index: {}]   ;;  %s176_s1 = inlined_call_operand.vmem [shape: f32[2,128], index: 1, kind: input, shape index: {}, may-alias: {1,2}]   ;;  %s177_s2 = inlined_call_operand.vmem [shape: f32[2,128], index: 2, kind: output, shape index: {}, may-alias: {1,2}]  }
   0x1   :  { %v147_v1 = vld [vmem:[%s175_s0] sm:$0x3]  ;;  %s121_s0 = smov 2   ;;  %s123_s15 = smov 4  }
   0x2   :  { %v152_v2 = vld [vmem:[%s176_s1] sm:$0x3]  ;;  %v154_v3 = vand.u32 127, %v15_v0  ;;  %v14_v4 = vmul.f32 %v147_v1, %v147_v1  ;;  %s122_s1 = smov 126   ;;  %s124_s16 = smov 124  }
   0x3   :  { %v13_v5 = vmul.f32 %v152_v2, %v147_v1  ;;  %s125_s17 = smov 8   ;;  %s126_s18 = smov 120  }
   0x4   :  { %17 = vrot.lane.b32.xlu0 %v154_v3, %s119_s13  ;;  %27 = vrot.lane.b32.xlu1 %v14_v4, %s120_s14  ;;  %s127_s19 = smov 16   ;;  %s128_s20 = smov 112  }
   0x8   :  { %25 = vrot.lane.b32.xlu0 %v14_v4, %s119_s13  ;;  %21 = vrot.lane.b32.xlu1 %v13_v5, %s119_s13 }
   0xc   :  { %23 = vrot.lane.b32.xlu0 %v13_v5, %s120_s14  ;;  %33 = vrot.lane.b32.xlu1 %v154_v3, %s121_s0 }
  0x76   :  { %v18_v6 = vpop.permute.xlu0 %17  ;;  %v28_v7 = vpop.permute.xlu1 %27 }
  0x77   :  { %v19_v8 = vxor.u32 %v18_v6, %v154_v3 }
  0x79   :  { %vm20_vm0 = vcmp.eq.s32.totalorder %v19_v8, 1 }
  0x7a   :  { %v26_v9 = vpop.permute.xlu0 %25  ;;  %v22_v12 = vpop.permute.xlu1 %21 }
  0x7b   :  { %v31_v10 = vsel %vm20_vm0, %v26_v9, %v28_v7 }
  0x7c   :  { %v32_v11 = vadd.f32 %v31_v10, %v14_v4 }
  0x7e   :  { %41 = vrot.lane.b32.xlu0 %v32_v11, %s121_s0  ;;  %v24_v13 = vpop.permute.xlu0 %23  ;;  %43 = vrot.lane.b32.xlu1 %v32_v11, %s122_s1  ;;  %v34_v16 = vpop.permute.xlu1 %33 }
  0x7f   :  { %v29_v14 = vsel %vm20_vm0, %v22_v12, %v24_v13  ;;  %v35_v17 = vxor.u32 %v34_v16, %v154_v3 }
  0x80   :  { %v30_v15 = vadd.f32 %v29_v14, %v13_v5 }
  0x81   :  { %vm36_vm1 = vcmp.eq.s32.totalorder %v35_v17, 2 }
  0x82   :  { %39 = vrot.lane.b32.xlu1 %v30_v15, %s122_s1  ;;  %37 = vrot.lane.b32.xlu0 %v30_v15, %s121_s0 }
  0x86   :  { %49 = vrot.lane.b32.xlu0 %v154_v3, %s123_s15 }
  0xf0   :  { %v42_v18 = vpop.permute.xlu0 %41  ;;  %v44_v19 = vpop.permute.xlu1 %43 }
  0xf1   :  { %v47_v20 = vsel %vm36_vm1, %v42_v18, %v44_v19 }
  0xf2   :  { %v48_v21 = vadd.f32 %v47_v20, %v32_v11 }
  0xf4   :  { %v38_v22 = vpop.permute.xlu0 %37  ;;  %59 = vrot.lane.b32.xlu0 %v48_v21, %s124_s16  ;;  %57 = vrot.lane.b32.xlu1 %v48_v21, %s123_s15  ;;  %v40_v23 = vpop.permute.xlu1 %39 }
  0xf5   :  { %v45_v24 = vsel %vm36_vm1, %v38_v22, %v40_v23 }
  0xf6   :  { %v46_v25 = vadd.f32 %v45_v24, %v30_v15 }
  0xf8   :  { %55 = vrot.lane.b32.xlu0 %v46_v25, %s124_s16  ;;  %53 = vrot.lane.b32.xlu1 %v46_v25, %s123_s15  ;;  %v50_v26 = vpop.permute.xlu0 %49 }
  0xf9   :  { %v51_v27 = vxor.u32 %v50_v26, %v154_v3 }
  0xfb   :  { %vm52_vm2 = vcmp.eq.s32.totalorder %v51_v27, 4 }
  0xfc   :  { %65 = vrot.lane.b32.xlu1 %v154_v3, %s125_s17 }
 0x166   :  { %v60_v28 = vpop.permute.xlu0 %59  ;;  %v58_v29 = vpop.permute.xlu1 %57 }
 0x167   :  { %v63_v30 = vsel %vm52_vm2, %v58_v29, %v60_v28 }
 0x168   :  { %v64_v31 = vadd.f32 %v63_v30, %v48_v21 }
 0x16a   :  { %v56_v32 = vpop.permute.xlu0 %55  ;;  %75 = vrot.lane.b32.xlu1 %v64_v31, %s126_s18  ;;  %73 = vrot.lane.b32.xlu0 %v64_v31, %s125_s17  ;;  %v54_v33 = vpop.permute.xlu1 %53 }
 0x16b   :  { %v61_v34 = vsel %vm52_vm2, %v54_v33, %v56_v32 }
 0x16c   :  { %v62_v35 = vadd.f32 %v61_v34, %v46_v25 }
 0x16e   :  { %71 = vrot.lane.b32.xlu1 %v62_v35, %s126_s18  ;;  %69 = vrot.lane.b32.xlu0 %v62_v35, %s125_s17  ;;  %v66_v36 = vpop.permute.xlu1 %65 }
 0x16f   :  { %v67_v37 = vxor.u32 %v66_v36, %v154_v3 }
 0x171   :  { %vm68_vm3 = vcmp.eq.s32.totalorder %v67_v37, 8 }
 0x172   :  { %81 = vrot.lane.b32.xlu0 %v154_v3, %s127_s19 }
 0x1dc   :  { %v74_v38 = vpop.permute.xlu0 %73  ;;  %v76_v39 = vpop.permute.xlu1 %75 }
 0x1dd   :  { %v79_v40 = vsel %vm68_vm3, %v74_v38, %v76_v39 }
 0x1de   :  { %v80_v41 = vadd.f32 %v79_v40, %v64_v31 }
 0x1e0   :  { %v70_v42 = vpop.permute.xlu0 %69  ;;  %91 = vrot.lane.b32.xlu0 %v80_v41, %s128_s20  ;;  %89 = vrot.lane.b32.xlu1 %v80_v41, %s127_s19  ;;  %v72_v43 = vpop.permute.xlu1 %71 }
 0x1e1   :  { %v77_v44 = vsel %vm68_vm3, %v70_v42, %v72_v43 }
 0x1e2   :  { %v78_v45 = vadd.f32 %v77_v44, %v62_v35 }
 0x1e4   :  { %87 = vrot.lane.b32.xlu0 %v78_v45, %s128_s20  ;;  %85 = vrot.lane.b32.xlu1 %v78_v45, %s127_s19  ;;  %v82_v46 = vpop.permute.xlu0 %81 }
 0x1e5   :  { %v83_v47 = vxor.u32 %v82_v46, %v154_v3 }
 0x1e7   :  { %vm84_vm4 = vcmp.eq.s32.totalorder %v83_v47, 16 }
 0x252   :  { %v92_v48 = vpop.permute.xlu0 %91  ;;  %v90_v49 = vpop.permute.xlu1 %89 }
 0x253   :  { %v95_v50 = vsel %vm84_vm4, %v90_v49, %v92_v48 }
 0x254   :  { %v96_v51 = vadd.f32 %v95_v50, %v80_v41 }
 0x256   :  { %117 = vrcp.f32 %v96_v51  ;;  %v88_v52 = vpop.permute.xlu0 %87  ;;  %v86_v53 = vpop.permute.xlu1 %85 }
 0x257   :  { %v93_v54 = vsel %vm84_vm4, %v86_v53, %v88_v52 }
 0x258   :  { %v94_v55 = vadd.f32 %v93_v54, %v78_v45 }
 0x25a   :  { %v97_v56 = vmul.f32 2.0, %v94_v55 }
 0x260   :  { %v118_v57 = vpop.eup %117 }
 0x261   :  { %v99_v58 = vmul.f32 %v118_v57, %v97_v56 }
 0x263   :  { %v100_v59 = vmul.f32 %v99_v58, %v147_v1 }
 0x265   :  { %v101_v60 = vsub.f32 %v152_v2, %v100_v59 }
 0x267   :  { %102 = vst [vmem:[%s177_s2] sm:$0x3] %v101_v60 }

</bundles_post_ra>
